<compile_context>
chip_gen: v6e
topology: v6e:2x2x1
jax: 0.10.0
libtpu: 0.0.40
codegen_flags: <defaults>
</compile_context>

<pallas_src>
import functools

import numpy as np
import jax
import jax.numpy as jnp
from jax.experimental import pallas as pl
from jax.experimental.pallas import tpu as pltpu


# ---------------------------------------------------------------------------
# Trace-time mask-pattern builders (pure numpy; mirror the torch loops).
# The pattern only depends on (codebook, position) -> shape (C, S).
# ---------------------------------------------------------------------------
def _periodic_pattern(C, S, period=7, offset=0, upper_codebook_mask=3):
    m = np.ones((C, S), dtype=np.int32)
    m[:, offset::period] = 0
    if upper_codebook_mask > 0:
        m[upper_codebook_mask:, :] = 1
    return m


def _random_pattern(C, S, mask_ratio=0.7, upper_codebook_mask=3):
    # torch "random" mask is deterministic strided unmasking.
    m = np.ones((C, S), dtype=np.int32)
    n_keep = int(S * (1.0 - mask_ratio))
    # TODO(synk): torch raises ZeroDivisionError when n_keep == 0; we clamp instead.
    stride = max(1, S // max(1, n_keep))
    m[:upper_codebook_mask, 0::stride] = 0
    if upper_codebook_mask > 0:
        m[upper_codebook_mask:, :] = 1
    return m


def _block_pattern(C, S, block_size=10, n_blocks=5, upper_codebook_mask=3):
    m = np.zeros((C, S), dtype=np.int32)
    block_stride = max(1, S // n_blocks)
    for i in range(n_blocks):
        start = i * block_stride
        end = min(start + block_size, S)
        m[:upper_codebook_mask, start:end] = 1
    if upper_codebook_mask > 0:
        m[upper_codebook_mask:, :] = 1
    return m


def _hybrid_pattern(C, S, periodic_period=7, block_size=5, upper_codebook_mask=3):
    p = _periodic_pattern(C, S, period=periodic_period,
                          upper_codebook_mask=upper_codebook_mask)
    b = _block_pattern(C, S, block_size=block_size, n_blocks=5,
                       upper_codebook_mask=upper_codebook_mask)
    return np.maximum(p, b)


def _build_pattern(mask_type, C, S, **kwargs):
    if mask_type == "periodic":
        return _periodic_pattern(C, S, **kwargs)
    elif mask_type == "random":
        return _random_pattern(C, S, **kwargs)
    elif mask_type == "block":
        return _block_pattern(C, S, **kwargs)
    elif mask_type == "hybrid":
        return _hybrid_pattern(C, S, **kwargs)
    raise ValueError(f"Unknown mask type: {mask_type}")


# ---------------------------------------------------------------------------
# Pallas kernel: pure load -> select -> store on the natural (tB, C, tS) block.
# ---------------------------------------------------------------------------
def _select_kernel(codes_ref, mask_ref, out_ref, *, mask_token):
    # mask==1 -> mask_token (scalar operand; no broadcast tile materialized),
    # mask==0 -> original code.  The (C, tS) mask broadcasts over the leading
    # batch dim of the block.
    m = mask_ref[...]
    out_ref[...] = jnp.where(m[None, :, :] != 0,
                             jnp.asarray(mask_token, dtype=out_ref.dtype),
                             codes_ref[...])


_LANE = 128
_DEFAULT_BLOCK_BYTES = 2 * 1024 * 1024   # ~2 MiB codes block per operand


def _choose_tiles(B, C, S, itemsize, target_bytes):
    """Pick (tB, tS) so a codes block is ~target_bytes, lane-friendly."""
    row_bytes = C * S * itemsize                       # one batch row
    if row_bytes > target_bytes:
        # Tile along S (multiple of 128, full C), one batch row per block.
        tB = 1
        tS = max(_LANE, (target_bytes // max(1, C * itemsize)) // _LANE * _LANE)
        if tS >= S:
            tS = S
    else:
        # Whole (C, S) rows fit: tile over batch only.
        tS = S
        tB = min(B, max(1, target_bytes // max(1, row_bytes)))
    # v7x has 2 TensorCores: keep >=2 parallel tiles for non-trivial problems
    # so both cores (and both DMA streams) are engaged.
    if pl.cdiv(B, tB) * pl.cdiv(S, tS) == 1 and B >= 2 and B * row_bytes > (1 << 20):
        tB = pl.cdiv(B, 2)
    return tB, tS


def advanced_mask_generator(codes, mask_type="periodic", *, mask_token=1024,
                            max_block_bytes=_DEFAULT_BLOCK_BYTES, **kwargs):
    """Pallas equivalent of AdvancedMaskGenerator.forward.

    codes: int32 array [batch, n_codebooks, seq_len]
    returns (mask [B,C,S] int32, masked_codes [B,C,S] codes.dtype)
    """
    B, C, S = codes.shape
    pattern = _build_pattern(mask_type, C, S, **kwargs)   # (C, S) int32, 0/1

    # Mask output: batch-invariant constant -> wrapper-side broadcast, no
    # kernel compute or per-batch stores.
    # TODO(synk): torch returns int64; consumers that accept the (C, S) pattern
    # (or int8) directly would avoid materializing this B*C*S int32 write.
    mask_cs = jnp.asarray(pattern, dtype=jnp.int32)
    mask = jnp.broadcast_to(mask_cs, (B, C, S))

    itemsize = np.dtype(codes.dtype).itemsize
    tB, tS = _choose_tiles(B, C, S, itemsize, max_block_bytes)
    n_s, n_b = pl.cdiv(S, tS), pl.cdiv(B, tB)

    kernel = functools.partial(_select_kernel, mask_token=mask_token)

    # Grid = (s_tiles, b_tiles): batch is the innermost axis so the (C, tS)
    # mask block index is unchanged across consecutive steps -> Pallas skips
    # its re-DMA; the pattern is fetched from HBM only ~once per s-tile.
    masked = pl.pallas_call(
        kernel,
        out_shape=jax.ShapeDtypeStruct((B, C, S), codes.dtype),
        grid=(n_s, n_b),
        in_specs=[
            pl.BlockSpec((tB, C, tS), lambda si, bi: (bi, 0, si)),   # codes
            pl.BlockSpec((C, tS), lambda si, bi: (0, si)),           # pattern
        ],
        out_specs=pl.BlockSpec((tB, C, tS), lambda si, bi: (bi, 0, si)),
        compiler_params=pltpu.CompilerParams(
            dimension_semantics=("parallel", "parallel"),
            vmem_limit_bytes=32 * 1024 * 1024),
    )(codes, mask_cs)

    return mask, masked


# ---------------------------------------------------------------------------
# Literal numpy transliteration of the torch module (independent reference).
# ---------------------------------------------------------------------------
def _ref_forward(codes, mask_type, mask_token=1024, **kwargs):
    B, C, S = codes.shape

    def periodic(period=7, offset=0, upper_codebook_mask=3):
        m = np.ones((B, C, S), dtype=np.int64)
        for i in range(offset, S, period):
            m[:, :, i] = 0
        if upper_codebook_mask > 0:
            m[:, upper_codebook_mask:, :] = 1
        return m

    def random_(mask_ratio=0.7, upper_codebook_mask=3):
        m = np.ones((B, C, S), dtype=np.int64)
        n_keep = int(S * (1 - mask_ratio))
        stride = max(1, S // max(1, n_keep))
        for i in range(0, S, stride):
            m[:, :upper_codebook_mask, i] = 0
        if upper_codebook_mask > 0:
            m[:, upper_codebook_mask:, :] = 1
        return m

    def block(block_size=10, n_blocks=5, upper_codebook_mask=3):
        m = np.zeros((B, C, S), dtype=np.int64)
        block_stride = max(1, S // n_blocks)
        for i in range(n_blocks):
            start = i * block_stride
            end = min(start + block_size, S)
            m[:, :upper_codebook_mask, start:end] = 1
        if upper_codebook_mask > 0:
            m[:, upper_codebook_mask:, :] = 1
        return m

    if mask_type == "periodic":
        m = periodic(**kwargs)
    elif mask_type == "random":
        m = random_(**kwargs)
    elif mask_type == "block":
        m = block(**kwargs)
    elif mask_type == "hybrid":
        pp = kwargs.get("periodic_period", 7)
        bs = kwargs.get("block_size", 5)
        ucm = kwargs.get("upper_codebook_mask", 3)
        m = np.maximum(periodic(period=pp, upper_codebook_mask=ucm),
                       block(block_size=bs, upper_codebook_mask=ucm))
    else:
        raise ValueError(mask_type)

    masked = np.where(m.astype(bool), np.full_like(codes, mask_token), codes)
    return m, masked


def _check(codes, mask_type, **kwargs):
    mask, masked = advanced_mask_generator(codes, mask_type, **kwargs)
    mask = np.asarray(jax.block_until_ready(mask))
    masked = np.asarray(jax.block_until_ready(masked))
    ref_mask, ref_masked = _ref_forward(np.asarray(codes), mask_type)
    return bool(np.array_equal(mask, ref_mask)) and bool(np.array_equal(masked, ref_masked))


if __name__ == "__main__":
    ok = True

    # Small default shapes (single-block grid=(1,1) path), all four mask types.
    B, C, S = 2, 14, 16
    codes = jax.random.randint(jax.random.PRNGKey(0), (B, C, S), 0, 1024,
                               dtype=jnp.int32)
    for mtype in ("periodic", "random", "block", "hybrid"):
        ok &= _check(codes, mtype)

    # Tiled path over S (with a partial edge tile) and over batch: force tiny
    # blocks so the grid machinery is exercised at small, fast shapes.
    codes2 = jax.random.randint(jax.random.PRNGKey(1), (3, 14, 500), 0, 1024,
                                dtype=jnp.int32)
    ok &= _check(codes2, "hybrid", max_block_bytes=4096)     # grid (4, 3)

    # Batch-tiled path (tB > 1, multiple batch tiles incl. a partial one).
    codes3 = jax.random.randint(jax.random.PRNGKey(2), (7, 14, 128), 0, 1024,
                                dtype=jnp.int32)
    ok &= _check(codes3, "periodic", max_block_bytes=14 * 128 * 4 * 2)  # grid (1, 4)

    print("KERNEL_OK" if ok else "KERNEL_MISMATCH")
</pallas_src>

<mosaic_0001>
module attributes {stable_mosaic.version = 11 : i64} {
  func.func @_select_kernel(%arg0: i32, %arg1: i32, %arg2: memref<2x14x16xi32, #tpu.memory_space<vmem>>, %arg3: memref<14x16xi32, #tpu.memory_space<vmem>>, %arg4: memref<2x14x16xi32, #tpu.memory_space<vmem>>) attributes {dimension_semantics = [#tpu.dimension_semantics<parallel>, #tpu.dimension_semantics<parallel>], iteration_bounds = array<i64: 1, 1>, scalar_prefetch = 0 : i64, scratch_operands = 0 : i64, tpu.core_type = #tpu.core_type<tc>, window_params = [{transform_indices = @transform_0, window_bounds = array<i64: 2, 14, 16>}, {transform_indices = @transform_1, window_bounds = array<i64: 14, 16>}, {transform_indices = @transform_2, window_bounds = array<i64: 2, 14, 16>}]} {
    %c0 = arith.constant 0 : index
    %c0_0 = arith.constant 0 : index
    %0 = vector.load %arg3[%c0, %c0_0] : memref<14x16xi32, #tpu.memory_space<vmem>>, vector<14x16xi32>
    %1 = vector.shape_cast %0 : vector<14x16xi32> to vector<1x14x16xi32>
    %c0_i32 = arith.constant 0 : i32
    %2 = vector.broadcast %c0_i32 : i32 to vector<1x14x16xi32>
    %3 = arith.cmpi ne, %1, %2 : vector<1x14x16xi32>
    %c0_1 = arith.constant 0 : index
    %c0_2 = arith.constant 0 : index
    %c0_3 = arith.constant 0 : index
    %4 = vector.load %arg2[%c0_1, %c0_2, %c0_3] : memref<2x14x16xi32, #tpu.memory_space<vmem>>, vector<2x14x16xi32>
    %c1024_i32 = arith.constant 1024 : i32
    %5 = vector.shape_cast %3 : vector<1x14x16xi1> to vector<1x14x16xi1>
    %6 = vector.broadcast %5 : vector<1x14x16xi1> to vector<2x14x16xi1>
    %7 = vector.broadcast %c1024_i32 : i32 to vector<2x14x16xi32>
    %8 = arith.select %6, %7, %4 : vector<2x14x16xi1>, vector<2x14x16xi32>
    %c0_4 = arith.constant 0 : index
    %c0_5 = arith.constant 0 : index
    %c0_6 = arith.constant 0 : index
    %9 = vector.load %arg4[%c0_4, %c0_5, %c0_6] : memref<2x14x16xi32, #tpu.memory_space<vmem>>, vector<2x14x16xi32>
    tpu.vector_store %arg4[%c0_4, %c0_5, %c0_6], %8 {strides = array<i32>} : memref<2x14x16xi32, #tpu.memory_space<vmem>>, vector<2x14x16xi32>,
    return
  }
  func.func @transform_0(%arg0: i32, %arg1: i32) -> (i32, i32, i32) {
    %c0_i32 = arith.constant 0 : i32
    %c0_i32_0 = arith.constant 0 : i32
    return %arg1, %c0_i32, %arg0 : i32, i32, i32
  }
  func.func @transform_1(%arg0: i32, %arg1: i32) -> (i32, i32) {
    %c0_i32 = arith.constant 0 : i32
    %c0_i32_0 = arith.constant 0 : i32
    return %c0_i32, %arg0 : i32, i32
  }
  func.func @transform_2(%arg0: i32, %arg1: i32) -> (i32, i32, i32) {
    %c0_i32 = arith.constant 0 : i32
    %c0_i32_0 = arith.constant 0 : i32
    return %arg1, %c0_i32, %arg0 : i32, i32, i32
  }
}

</mosaic_0001>

<bundles_post_ra>
// kernel: tpu_custom_call.1
= control target key start
LH: loop header
LB: loop body
LE: loop exit
PB: predicated region body
PF: predicated region fallthrough
CT: control target
= control target key end

     0   :  { %vm27_vm0 = vcmask 130048   ;;  %vm29_vm1 = vcmask 128000   ;;  %s82_s0 = inlined_call_operand.vmem [shape: s32[2,14,16], index: 0, kind: input, shape index: {}]   ;;  %s83_s1 = inlined_call_operand.vmem [shape: s32[14,16], index: 1, kind: input, shape index: {}]   ;;  %s84_s2 = inlined_call_operand.vmem [shape: s32[2,14,16], index: 2, kind: output, shape index: {}]  }
   0x1   :  { %v11_v0 = vld [vmem:[%s83_s1] sm:$0xff]  ;;  %v12_v2 = vld [vmem:[%s83_s1 + $0x8] sm:$0x3f]  ;;  %v17_v4 = vld [vmem:[%s82_s0 + $0x10] sm:$0xff] }
   0x2   :  { %v15_v1 = vld [vmem:[%s82_s0] sm:$0xff]  ;;  %vm13_vm2 = vcmp.ne.s32.totalorder %v11_v0, 0  ;;  %vm14_vm3 = vcmp.ne.s32.totalorder %v12_v2, 0  ;;  %v16_v3 = vld [vmem:[%s82_s0 + $0x8] sm:$0x3f] }
   0x3   :  { %v23_v5 = vsel %vm13_vm2, 1024, %v15_v1  ;;  %v24_v6 = vsel %vm14_vm3, 1024, %v16_v3  ;;  %v25_v7 = vsel %vm13_vm2, 1024, %v17_v4  ;;  %v18_v8 = vld [vmem:[%s82_s0 + $0x18] sm:$0x3f] }
   0x4   :  { %28 = vst.msk [vmem:[%s84_s2] sm:$0xff] %vm27_vm0, %v23_v5  ;;  %31 = vst.msk [vmem:[%s84_s2 + $0x10] sm:$0xff] %vm27_vm0, %v25_v7  ;;  %v26_v9 = vsel %vm14_vm3, 1024, %v18_v8 }
   0x5   :  { %30 = vst.msk [vmem:[%s84_s2 + $0x8] sm:$0x3f] %vm29_vm1, %v24_v6  ;;  %32 = vst.msk [vmem:[%s84_s2 + $0x18] sm:$0x3f] %vm29_vm1, %v26_v9 }

</bundles_post_ra>
